<compile_context>
chip_gen: v7x
topology: tpu7x:2x2x1
jax: 0.10.0
libtpu: 0.0.40
codegen_flags: <defaults>
</compile_context>

<pallas_src>
import functools

import jax
import jax.numpy as jnp
from jax import lax
from jax.experimental import pallas as pl
from jax.experimental.pallas import tpu as pltpu


def _se2d_kernel(x_ref, w_ref, b_ref, ws_ref, we_ref, mask_ref, out_ref, *,
                 k_s, stride, dilation, wp, hw_true, n):
    # x_ref    : (1, C_in, L_in)      flattened zero-padded image (compute dtype)
    # w_ref    : (k*k, C_out, C_in)   `en` conv taps (compute dtype)
    # b_ref    : (C_out, 1)           `en` conv bias (f32)
    # ws_ref   : (2, h*n, C_out)      squeeze conv; [0] hits the mean, [1] the max (f32)
    # we_ref   : (n*C_out, n*h)       block-diagonal excite conv weight (f32)
    # mask_ref : (1, L_out)           1.0 where the padded-space column is a real output
    # out_ref  : (1, n*C_out, L_out)  n scaled copies, stacked on the channel (sublane) axis
    c_out = w_ref.shape[1]
    l_out = out_ref.shape[2]

    # `en` conv: accumulate k_s*k_s lane-shifted matmuls over the flattened padded image.
    acc = jnp.zeros((c_out, l_out), jnp.float32)
    for kh in range(k_s):
        for kw in range(k_s):
            shift = (kh * wp + kw) * dilation
            if stride == 1:
                sl = x_ref[0, :, pl.ds(shift, l_out)]
            else:  # strided window via strided dynamic slice (untested in the demo)
                sl = x_ref[0, :, pl.ds(shift, l_out, stride)]
            acc = acc + jnp.dot(w_ref[kh * k_s + kw], sl,
                                preferred_element_type=jnp.float32)
    x = acc + b_ref[...]                                    # (C_out, L_out) f32

    # squeeze: masked global mean / max over spatial positions (lane reduction)
    mask = mask_ref[...]                                     # (1, L_out) f32
    mean = jnp.sum(x * mask, axis=1, keepdims=True) * (1.0 / hw_true)      # (C_out, 1)
    amax = jnp.max(jnp.where(mask > 0.5, x, -jnp.inf), axis=1, keepdims=True)

    # s conv on cat([mean, max]) + ReLU, then block-diagonal excite + sigmoid
    hid = (jnp.dot(ws_ref[0], mean, preferred_element_type=jnp.float32)
           + jnp.dot(ws_ref[1], amax, preferred_element_type=jnp.float32))  # (h*n, 1)
    hid = jnp.maximum(hid, 0.0)
    attn = jax.nn.sigmoid(jnp.dot(we_ref[...], hid,
                                  preferred_element_type=jnp.float32))      # (n*C_out, 1)

    # per-group channel scaling, single full-width (lane-dense) store
    out_ref[0, :, :] = (jnp.tile(x, (n, 1)) * attn).astype(out_ref.dtype)


def se2d_forward(x_nchw, params, *, k_s, stride, padding, dilation, groups, fact, n,
                 compute_dtype=jnp.bfloat16):
    """Pallas implementation of SE2d.forward. Returns a list of n NCHW arrays."""
    assert groups == 1  # TODO(synk): grouped `en` conv (g > 1) not implemented.
    w_en, b_en, w_s, w_e = params["w_en"], params["b_en"], params["w_s"], params["w_e"]
    c_out, c_in = w_en.shape[0], w_en.shape[1]
    h = c_out // fact
    B, _, H, W = x_nchw.shape

    Hp, Wp = H + 2 * padding, W + 2 * padding
    H_out = (Hp - dilation * (k_s - 1) - 1) // stride + 1
    W_out = (Wp - dilation * (k_s - 1) - 1) // stride + 1
    # Output positions live in "padded space": lane q = ho*Wp + wo (columns wo >= W_out
    # are wrap-around garbage and get masked / sliced away).
    L_out = H_out * Wp
    shift_max = (k_s - 1) * dilation * (Wp + 1)
    L_in = max(Hp * Wp, stride * (L_out - 1) + shift_max + 1)

    # ---- glue: zero-pad spatially, flatten HW, pad tail. Stays NCHW; no transpose. ----
    xp = jnp.pad(x_nchw, ((0, 0), (0, 0), (padding, padding), (padding, padding)))
    x_flat = xp.reshape(B, c_in, Hp * Wp)
    x_flat = jnp.pad(x_flat, ((0, 0), (0, 0), (0, L_in - Hp * Wp)))
    x_flat = x_flat.astype(compute_dtype)

    # ---- glue: weights in kernel layouts ----
    w_k = jnp.transpose(w_en, (2, 3, 0, 1)).reshape(k_s * k_s, c_out, c_in)
    w_k = w_k.astype(compute_dtype)                                  # (k*k, Cout, Cin)
    b_k = b_en.reshape(c_out, 1).astype(jnp.float32)                 # (Cout, 1)
    w_s2d = w_s[:, :, 0, 0].astype(jnp.float32)                      # (h*n, 2*Cout)
    w_s_k = jnp.stack([w_s2d[:, :c_out], w_s2d[:, c_out:]], 0)       # (2, h*n, Cout)
    w_e2d = w_e[:, :, 0, 0].astype(jnp.float32)                      # (n*Cout, h)
    w_e_bd = jnp.zeros((n * c_out, n * h), jnp.float32)              # block-diagonal excite
    for j in range(n):
        w_e_bd = w_e_bd.at[j * c_out:(j + 1) * c_out, j * h:(j + 1) * h].set(
            w_e2d[j * c_out:(j + 1) * c_out, :])

    # validity mask over padded-space output columns
    col = jnp.arange(L_out, dtype=jnp.int32)
    mask = ((col % Wp) < W_out).astype(jnp.float32).reshape(1, L_out)

    kernel = functools.partial(
        _se2d_kernel, k_s=k_s, stride=stride, dilation=dilation, wp=Wp,
        hw_true=float(H_out * W_out), n=n)

    # scoped VMEM: double-buffered blocks + headroom
    block_bytes = (c_in * L_in * jnp.dtype(compute_dtype).itemsize
                   + n * c_out * L_out * 4
                   + k_s * k_s * c_out * c_in * jnp.dtype(compute_dtype).itemsize
                   + (2 * h * n * c_out + n * c_out * n * h + c_out + L_out) * 4)
    vmem_limit = int(min(100 * 2**20, max(32 * 2**20, 4 * block_bytes)))

    out_flat = pl.pallas_call(
        kernel,
        out_shape=jax.ShapeDtypeStruct((B, n * c_out, L_out), jnp.float32),
        grid=(B,),
        in_specs=[
            pl.BlockSpec((1, c_in, L_in), lambda b: (b, 0, 0)),
            pl.BlockSpec((k_s * k_s, c_out, c_in), lambda b: (0, 0, 0)),
            pl.BlockSpec((c_out, 1), lambda b: (0, 0)),
            pl.BlockSpec((2, h * n, c_out), lambda b: (0, 0, 0)),
            pl.BlockSpec((n * c_out, n * h), lambda b: (0, 0)),
            pl.BlockSpec((1, L_out), lambda b: (0, 0)),
        ],
        out_specs=pl.BlockSpec((1, n * c_out, L_out), lambda b: (b, 0, 0)),
        compiler_params=pltpu.CompilerParams(
            dimension_semantics=("parallel",),
            vmem_limit_bytes=vmem_limit),
    )(x_flat, w_k, b_k, w_s_k, w_e_bd, mask)

    # drop the wrap-around columns; layout is already NCHW
    out = out_flat.reshape(B, n * c_out, H_out, Wp)[..., :W_out]
    return [out[:, j * c_out:(j + 1) * c_out] for j in range(n)]


def se2d_reference(x_nchw, params, *, k_s, stride, padding, dilation, groups, fact, n):
    """Pure-JAX reference mirroring the PyTorch forward exactly."""
    w_en, b_en, w_s, w_e = params["w_en"], params["b_en"], params["w_s"], params["w_e"]
    c_out = w_en.shape[0]
    dn = ("NCHW", "OIHW", "NCHW")
    x = lax.conv_general_dilated(
        x_nchw, w_en, (stride, stride), [(padding, padding), (padding, padding)],
        rhs_dilation=(dilation, dilation), dimension_numbers=dn,
        feature_group_count=groups)
    x = x + b_en[None, :, None, None]
    x_se = jnp.concatenate([x.mean(axis=(2, 3), keepdims=True),
                            x.max(axis=(2, 3), keepdims=True)], axis=1)
    hid = jax.nn.relu(lax.conv_general_dilated(
        x_se, w_s, (1, 1), "VALID", dimension_numbers=dn))
    attn = jax.nn.sigmoid(lax.conv_general_dilated(
        hid, w_e, (1, 1), "VALID", dimension_numbers=dn, feature_group_count=n))
    return [x * attn[:, j * c_out:(j + 1) * c_out] for j in range(n)]


if __name__ == "__main__":
    # SE2d(c_in=4, c_out=8, k_s=3, s=1, p=1, d=1, g=1, b=True, fact=4, n=2)
    B, c_in, H, W = 2, 4, 16, 16
    c_out, k_s, stride, padding, dilation, groups, fact, n = 8, 3, 1, 1, 1, 1, 4, 2
    h = c_out // fact

    key = jax.random.PRNGKey(0)
    k1, k2, k3, k4, k5 = jax.random.split(key, 5)
    x = jax.random.normal(k1, (B, c_in, H, W), jnp.float32)
    params = dict(
        w_en=0.1 * jax.random.normal(k2, (c_out, c_in, k_s, k_s), jnp.float32),
        b_en=0.1 * jax.random.normal(k3, (c_out,), jnp.float32),
        w_s=0.1 * jax.random.normal(k4, (h * n, 2 * c_out, 1, 1), jnp.float32),
        w_e=0.1 * jax.random.normal(k5, (c_out * n, h, 1, 1), jnp.float32),
    )
    cfg = dict(k_s=k_s, stride=stride, padding=padding, dilation=dilation,
               groups=groups, fact=fact, n=n)

    refs = se2d_reference(x, params, **cfg)

    # f32 path: tight check against the reference
    outs32 = se2d_forward(x, params, **cfg, compute_dtype=jnp.float32)
    outs32 = [jax.block_until_ready(o) for o in outs32]
    assert len(outs32) == n
    for o, r in zip(outs32, refs):
        assert o.shape == r.shape == (B, c_out, H, W)
        assert jnp.allclose(o, r, rtol=1e-4, atol=1e-4), float(jnp.max(jnp.abs(o - r)))

    # bf16 path (default, HBM/MXU-optimized): bf16-level tolerance
    outs = se2d_forward(x, params, **cfg)
    outs = [jax.block_until_ready(o) for o in outs]
    assert len(outs) == n
    for o, r in zip(outs, refs):
        assert o.shape == r.shape == (B, c_out, H, W)
        assert jnp.allclose(o, r, rtol=3e-2, atol=3e-2), float(jnp.max(jnp.abs(o - r)))

    print("KERNEL_OK")
</pallas_src>

<mosaic_0001>
module attributes {stable_mosaic.version = 11 : i64} {
  func.func @_se2d_kernel(%arg0: i32, %arg1: memref<1x4x326xf32, #tpu.memory_space<vmem>>, %arg2: memref<9x8x4xf32, #tpu.memory_space<vmem>>, %arg3: memref<8x1xf32, #tpu.memory_space<vmem>>, %arg4: memref<2x4x8xf32, #tpu.memory_space<vmem>>, %arg5: memref<16x4xf32, #tpu.memory_space<vmem>>, %arg6: memref<1x288xf32, #tpu.memory_space<vmem>>, %arg7: memref<1x16x288xf32, #tpu.memory_space<vmem>>) attributes {dimension_semantics = [#tpu.dimension_semantics<parallel>], iteration_bounds = array<i64: 2>, scalar_prefetch = 0 : i64, scratch_operands = 0 : i64, tpu.core_type = #tpu.core_type<tc>, window_params = [{transform_indices = @transform_0, window_bounds = array<i64: 1, 4, 326>}, {pipeline_mode = #tpu.pipeline_mode<synchronous>, transform_indices = @transform_1, window_bounds = array<i64: 9, 8, 4>}, {pipeline_mode = #tpu.pipeline_mode<synchronous>, transform_indices = @transform_2, window_bounds = array<i64: 8, 1>}, {pipeline_mode = #tpu.pipeline_mode<synchronous>, transform_indices = @transform_3, window_bounds = array<i64: 2, 4, 8>}, {pipeline_mode = #tpu.pipeline_mode<synchronous>, transform_indices = @transform_4, window_bounds = array<i64: 16, 4>}, {pipeline_mode = #tpu.pipeline_mode<synchronous>, transform_indices = @transform_5, window_bounds = array<i64: 1, 288>}, {transform_indices = @transform_6, window_bounds = array<i64: 1, 16, 288>}]} {
    %cst = arith.constant 0.000000e+00 : f32
    %0 = vector.broadcast %cst : f32 to vector<8x288xf32>
    %c0 = arith.constant 0 : index
    %c0_0 = arith.constant 0 : index
    %c0_1 = arith.constant 0 : index
    %1 = vector.load %arg1[%c0, %c0_0, %c0_1] : memref<1x4x326xf32, #tpu.memory_space<vmem>>, vector<1x4x288xf32>
    %2 = vector.shape_cast %1 : vector<1x4x288xf32> to vector<4x288xf32>
    %c0_2 = arith.constant 0 : index
    %c0_3 = arith.constant 0 : index
    %c0_4 = arith.constant 0 : index
    %3 = vector.load %arg2[%c0_2, %c0_3, %c0_4] : memref<9x8x4xf32, #tpu.memory_space<vmem>>, vector<1x8x4xf32>
    %4 = vector.shape_cast %3 : vector<1x8x4xf32> to vector<8x4xf32>
    %cst_5 = arith.constant dense<0.000000e+00> : vector<8x288xf32>
    %5 = tpu.matmul %4, %2, %cst_5 {dimension_numbers = #tpu.dot_dimension_numbers<[1], [0], [0], [1], [0, 0, 1, 1], [], []>} : vector<8x4xf32>, vector<4x288xf32>, vector<8x288xf32> -> vector<8x288xf32>
    %6 = arith.addf %0, %5 : vector<8x288xf32>
    %c0_6 = arith.constant 0 : index
    %c0_7 = arith.constant 0 : index
    %c1 = arith.constant 1 : index
    %7 = vector.load %arg1[%c0_6, %c0_7, %c1] : memref<1x4x326xf32, #tpu.memory_space<vmem>>, vector<1x4x288xf32>
    %8 = vector.shape_cast %7 : vector<1x4x288xf32> to vector<4x288xf32>
    %c1_8 = arith.constant 1 : index
    %c0_9 = arith.constant 0 : index
    %c0_10 = arith.constant 0 : index
    %9 = vector.load %arg2[%c1_8, %c0_9, %c0_10] : memref<9x8x4xf32, #tpu.memory_space<vmem>>, vector<1x8x4xf32>
    %10 = vector.shape_cast %9 : vector<1x8x4xf32> to vector<8x4xf32>
    %cst_11 = arith.constant dense<0.000000e+00> : vector<8x288xf32>
    %11 = tpu.matmul %10, %8, %cst_11 {dimension_numbers = #tpu.dot_dimension_numbers<[1], [0], [0], [1], [0, 0, 1, 1], [], []>} : vector<8x4xf32>, vector<4x288xf32>, vector<8x288xf32> -> vector<8x288xf32>
    %12 = arith.addf %6, %11 : vector<8x288xf32>
    %c0_12 = arith.constant 0 : index
    %c0_13 = arith.constant 0 : index
    %c2 = arith.constant 2 : index
    %13 = vector.load %arg1[%c0_12, %c0_13, %c2] : memref<1x4x326xf32, #tpu.memory_space<vmem>>, vector<1x4x288xf32>
    %14 = vector.shape_cast %13 : vector<1x4x288xf32> to vector<4x288xf32>
    %c2_14 = arith.constant 2 : index
    %c0_15 = arith.constant 0 : index
    %c0_16 = arith.constant 0 : index
    %15 = vector.load %arg2[%c2_14, %c0_15, %c0_16] : memref<9x8x4xf32, #tpu.memory_space<vmem>>, vector<1x8x4xf32>
    %16 = vector.shape_cast %15 : vector<1x8x4xf32> to vector<8x4xf32>
    %cst_17 = arith.constant dense<0.000000e+00> : vector<8x288xf32>
    %17 = tpu.matmul %16, %14, %cst_17 {dimension_numbers = #tpu.dot_dimension_numbers<[1], [0], [0], [1], [0, 0, 1, 1], [], []>} : vector<8x4xf32>, vector<4x288xf32>, vector<8x288xf32> -> vector<8x288xf32>
    %18 = arith.addf %12, %17 : vector<8x288xf32>
    %c0_18 = arith.constant 0 : index
    %c0_19 = arith.constant 0 : index
    %c18 = arith.constant 18 : index
    %19 = vector.load %arg1[%c0_18, %c0_19, %c18] : memref<1x4x326xf32, #tpu.memory_space<vmem>>, vector<1x4x288xf32>
    %20 = vector.shape_cast %19 : vector<1x4x288xf32> to vector<4x288xf32>
    %c3 = arith.constant 3 : index
    %c0_20 = arith.constant 0 : index
    %c0_21 = arith.constant 0 : index
    %21 = vector.load %arg2[%c3, %c0_20, %c0_21] : memref<9x8x4xf32, #tpu.memory_space<vmem>>, vector<1x8x4xf32>
    %22 = vector.shape_cast %21 : vector<1x8x4xf32> to vector<8x4xf32>
    %cst_22 = arith.constant dense<0.000000e+00> : vector<8x288xf32>
    %23 = tpu.matmul %22, %20, %cst_22 {dimension_numbers = #tpu.dot_dimension_numbers<[1], [0], [0], [1], [0, 0, 1, 1], [], []>} : vector<8x4xf32>, vector<4x288xf32>, vector<8x288xf32> -> vector<8x288xf32>
    %24 = arith.addf %18, %23 : vector<8x288xf32>
    %c0_23 = arith.constant 0 : index
    %c0_24 = arith.constant 0 : index
    %c19 = arith.constant 19 : index
    %25 = vector.load %arg1[%c0_23, %c0_24, %c19] : memref<1x4x326xf32, #tpu.memory_space<vmem>>, vector<1x4x288xf32>
    %26 = vector.shape_cast %25 : vector<1x4x288xf32> to vector<4x288xf32>
    %c4 = arith.constant 4 : index
    %c0_25 = arith.constant 0 : index
    %c0_26 = arith.constant 0 : index
    %27 = vector.load %arg2[%c4, %c0_25, %c0_26] : memref<9x8x4xf32, #tpu.memory_space<vmem>>, vector<1x8x4xf32>
    %28 = vector.shape_cast %27 : vector<1x8x4xf32> to vector<8x4xf32>
    %cst_27 = arith.constant dense<0.000000e+00> : vector<8x288xf32>
    %29 = tpu.matmul %28, %26, %cst_27 {dimension_numbers = #tpu.dot_dimension_numbers<[1], [0], [0], [1], [0, 0, 1, 1], [], []>} : vector<8x4xf32>, vector<4x288xf32>, vector<8x288xf32> -> vector<8x288xf32>
    %30 = arith.addf %24, %29 : vector<8x288xf32>
    %c0_28 = arith.constant 0 : index
    %c0_29 = arith.constant 0 : index
    %c20 = arith.constant 20 : index
    %31 = vector.load %arg1[%c0_28, %c0_29, %c20] : memref<1x4x326xf32, #tpu.memory_space<vmem>>, vector<1x4x288xf32>
    %32 = vector.shape_cast %31 : vector<1x4x288xf32> to vector<4x288xf32>
    %c5 = arith.constant 5 : index
    %c0_30 = arith.constant 0 : index
    %c0_31 = arith.constant 0 : index
    %33 = vector.load %arg2[%c5, %c0_30, %c0_31] : memref<9x8x4xf32, #tpu.memory_space<vmem>>, vector<1x8x4xf32>
    %34 = vector.shape_cast %33 : vector<1x8x4xf32> to vector<8x4xf32>
    %cst_32 = arith.constant dense<0.000000e+00> : vector<8x288xf32>
    %35 = tpu.matmul %34, %32, %cst_32 {dimension_numbers = #tpu.dot_dimension_numbers<[1], [0], [0], [1], [0, 0, 1, 1], [], []>} : vector<8x4xf32>, vector<4x288xf32>, vector<8x288xf32> -> vector<8x288xf32>
    %36 = arith.addf %30, %35 : vector<8x288xf32>
    %c0_33 = arith.constant 0 : index
    %c0_34 = arith.constant 0 : index
    %c36 = arith.constant 36 : index
    %37 = vector.load %arg1[%c0_33, %c0_34, %c36] : memref<1x4x326xf32, #tpu.memory_space<vmem>>, vector<1x4x288xf32>
    %38 = vector.shape_cast %37 : vector<1x4x288xf32> to vector<4x288xf32>
    %c6 = arith.constant 6 : index
    %c0_35 = arith.constant 0 : index
    %c0_36 = arith.constant 0 : index
    %39 = vector.load %arg2[%c6, %c0_35, %c0_36] : memref<9x8x4xf32, #tpu.memory_space<vmem>>, vector<1x8x4xf32>
    %40 = vector.shape_cast %39 : vector<1x8x4xf32> to vector<8x4xf32>
    %cst_37 = arith.constant dense<0.000000e+00> : vector<8x288xf32>
    %41 = tpu.matmul %40, %38, %cst_37 {dimension_numbers = #tpu.dot_dimension_numbers<[1], [0], [0], [1], [0, 0, 1, 1], [], []>} : vector<8x4xf32>, vector<4x288xf32>, vector<8x288xf32> -> vector<8x288xf32>
    %42 = arith.addf %36, %41 : vector<8x288xf32>
    %c0_38 = arith.constant 0 : index
    %c0_39 = arith.constant 0 : index
    %c37 = arith.constant 37 : index
    %43 = vector.load %arg1[%c0_38, %c0_39, %c37] : memref<1x4x326xf32, #tpu.memory_space<vmem>>, vector<1x4x288xf32>
    %44 = vector.shape_cast %43 : vector<1x4x288xf32> to vector<4x288xf32>
    %c7 = arith.constant 7 : index
    %c0_40 = arith.constant 0 : index
    %c0_41 = arith.constant 0 : index
    %45 = vector.load %arg2[%c7, %c0_40, %c0_41] : memref<9x8x4xf32, #tpu.memory_space<vmem>>, vector<1x8x4xf32>
    %46 = vector.shape_cast %45 : vector<1x8x4xf32> to vector<8x4xf32>
    %cst_42 = arith.constant dense<0.000000e+00> : vector<8x288xf32>
    %47 = tpu.matmul %46, %44, %cst_42 {dimension_numbers = #tpu.dot_dimension_numbers<[1], [0], [0], [1], [0, 0, 1, 1], [], []>} : vector<8x4xf32>, vector<4x288xf32>, vector<8x288xf32> -> vector<8x288xf32>
    %48 = arith.addf %42, %47 : vector<8x288xf32>
    %c0_43 = arith.constant 0 : index
    %c0_44 = arith.constant 0 : index
    %c38 = arith.constant 38 : index
    %49 = vector.load %arg1[%c0_43, %c0_44, %c38] : memref<1x4x326xf32, #tpu.memory_space<vmem>>, vector<1x4x288xf32>
    %50 = vector.shape_cast %49 : vector<1x4x288xf32> to vector<4x288xf32>
    %c8 = arith.constant 8 : index
    %c0_45 = arith.constant 0 : index
    %c0_46 = arith.constant 0 : index
    %51 = vector.load %arg2[%c8, %c0_45, %c0_46] : memref<9x8x4xf32, #tpu.memory_space<vmem>>, vector<1x8x4xf32>
    %52 = vector.shape_cast %51 : vector<1x8x4xf32> to vector<8x4xf32>
    %cst_47 = arith.constant dense<0.000000e+00> : vector<8x288xf32>
    %53 = tpu.matmul %52, %50, %cst_47 {dimension_numbers = #tpu.dot_dimension_numbers<[1], [0], [0], [1], [0, 0, 1, 1], [], []>} : vector<8x4xf32>, vector<4x288xf32>, vector<8x288xf32> -> vector<8x288xf32>
    %54 = arith.addf %48, %53 : vector<8x288xf32>
    %c0_48 = arith.constant 0 : index
    %c0_49 = arith.constant 0 : index
    %55 = vector.load %arg3[%c0_48, %c0_49] : memref<8x1xf32, #tpu.memory_space<vmem>>, vector<8x1xf32>
    %56 = vector.broadcast %55 : vector<8x1xf32> to vector<8x288xf32>
    %57 = arith.addf %54, %56 : vector<8x288xf32>
    %c0_50 = arith.constant 0 : index
    %c0_51 = arith.constant 0 : index
    %58 = vector.load %arg6[%c0_50, %c0_51] : memref<1x288xf32, #tpu.memory_space<vmem>>, vector<1x288xf32>
    %59 = vector.broadcast %58 : vector<1x288xf32> to vector<8x288xf32>
    %60 = arith.mulf %57, %59 : vector<8x288xf32>
    %cst_52 = arith.constant dense<0.000000e+00> : vector<8xf32>
    %61 = vector.multi_reduction <add>, %60, %cst_52 [1] : vector<8x288xf32> to vector<8xf32>
    %62 = vector.shape_cast %61 : vector<8xf32> to vector<8x1xf32>
    %cst_53 = arith.constant 3.906250e-03 : f32
    %63 = vector.broadcast %cst_53 : f32 to vector<8x1xf32>
    %64 = arith.mulf %62, %63 : vector<8x1xf32>
    %cst_54 = arith.constant 5.000000e-01 : f32
    %65 = vector.broadcast %cst_54 : f32 to vector<1x288xf32>
    %66 = arith.cmpf ogt, %58, %65 : vector<1x288xf32>
    %cst_55 = arith.constant 0xFF800000 : f32
    %67 = vector.shape_cast %66 : vector<1x288xi1> to vector<1x288xi1>
    %68 = vector.broadcast %67 : vector<1x288xi1> to vector<8x288xi1>
    %69 = vector.broadcast %cst_55 : f32 to vector<8x288xf32>
    %70 = arith.select %68, %57, %69 : vector<8x288xi1>, vector<8x288xf32>
    %cst_56 = arith.constant dense<0xFF800000> : vector<8xf32>
    %71 = vector.multi_reduction <maximumf>, %70, %cst_56 [1] : vector<8x288xf32> to vector<8xf32>
    %72 = vector.shape_cast %71 : vector<8xf32> to vector<8x1xf32>
    %c0_57 = arith.constant 0 : index
    %c0_58 = arith.constant 0 : index
    %c0_59 = arith.constant 0 : index
    %73 = vector.load %arg4[%c0_57, %c0_58, %c0_59] : memref<2x4x8xf32, #tpu.memory_space<vmem>>, vector<1x4x8xf32>
    %74 = vector.shape_cast %73 : vector<1x4x8xf32> to vector<4x8xf32>
    %cst_60 = arith.constant dense<0.000000e+00> : vector<4x1xf32>
    %75 = tpu.matmul %74, %64, %cst_60 {dimension_numbers = #tpu.dot_dimension_numbers<[1], [0], [0], [1], [0, 0, 1, 1], [], []>} : vector<4x8xf32>, vector<8x1xf32>, vector<4x1xf32> -> vector<4x1xf32>
    %c1_61 = arith.constant 1 : index
    %c0_62 = arith.constant 0 : index
    %c0_63 = arith.constant 0 : index
    %76 = vector.load %arg4[%c1_61, %c0_62, %c0_63] : memref<2x4x8xf32, #tpu.memory_space<vmem>>, vector<1x4x8xf32>
    %77 = vector.shape_cast %76 : vector<1x4x8xf32> to vector<4x8xf32>
    %cst_64 = arith.constant dense<0.000000e+00> : vector<4x1xf32>
    %78 = tpu.matmul %77, %72, %cst_64 {dimension_numbers = #tpu.dot_dimension_numbers<[1], [0], [0], [1], [0, 0, 1, 1], [], []>} : vector<4x8xf32>, vector<8x1xf32>, vector<4x1xf32> -> vector<4x1xf32>
    %79 = arith.addf %75, %78 : vector<4x1xf32>
    %cst_65 = arith.constant 0.000000e+00 : f32
    %80 = vector.broadcast %cst_65 : f32 to vector<4x1xf32>
    %81 = arith.maximumf %79, %80 : vector<4x1xf32>
    %c0_66 = arith.constant 0 : index
    %c0_67 = arith.constant 0 : index
    %82 = vector.load %arg5[%c0_66, %c0_67] : memref<16x4xf32, #tpu.memory_space<vmem>>, vector<16x4xf32>
    %cst_68 = arith.constant dense<0.000000e+00> : vector<16x1xf32>
    %83 = tpu.matmul %82, %81, %cst_68 {dimension_numbers = #tpu.dot_dimension_numbers<[1], [0], [0], [1], [0, 0, 1, 1], [], []>} : vector<16x4xf32>, vector<4x1xf32>, vector<16x1xf32> -> vector<16x1xf32>
    %84 = arith.negf %83 : vector<16x1xf32>
    %85 = math.exp %84 : vector<16x1xf32>
    %cst_69 = arith.constant 1.000000e+00 : f32
    %86 = vector.broadcast %cst_69 : f32 to vector<16x1xf32>
    %87 = arith.addf %86, %85 : vector<16x1xf32>
    %88 = arith.divf %86, %87 : vector<16x1xf32>
    %89 = tpu.concatenate %57, %57 in 0 : vector<8x288xf32>, vector<8x288xf32> -> vector<16x288xf32>
    %90 = vector.broadcast %88 : vector<16x1xf32> to vector<16x288xf32>
    %91 = arith.mulf %89, %90 : vector<16x288xf32>
    %c0_70 = arith.constant 0 : index
    %c0_71 = arith.constant 0 : index
    %c0_72 = arith.constant 0 : index
    %92 = vector.load %arg7[%c0_70, %c0_71, %c0_72] : memref<1x16x288xf32, #tpu.memory_space<vmem>>, vector<1x16x288xf32>
    %93 = vector.shape_cast %92 : vector<1x16x288xf32> to vector<16x288xf32>
    %94 = vector.shape_cast %91 : vector<16x288xf32> to vector<1x16x288xf32>
    tpu.vector_store %arg7[%c0_70, %c0_71, %c0_72], %94 {strides = array<i32>} : memref<1x16x288xf32, #tpu.memory_space<vmem>>, vector<1x16x288xf32>,
    return
  }
  func.func @transform_0(%arg0: i32) -> (i32, i32, i32) {
    %c0_i32 = arith.constant 0 : i32
    %c0_i32_0 = arith.constant 0 : i32
    %c0_i32_1 = arith.constant 0 : i32
    return %arg0, %c0_i32, %c0_i32_0 : i32, i32, i32
  }
  func.func @transform_1(%arg0: i32) -> (i32, i32, i32) {
    %c0_i32 = arith.constant 0 : i32
    %c0_i32_0 = arith.constant 0 : i32
    %c0_i32_1 = arith.constant 0 : i32
    %c0_i32_2 = arith.constant 0 : i32
    return %c0_i32, %c0_i32_0, %c0_i32_1 : i32, i32, i32
  }
  func.func @transform_2(%arg0: i32) -> (i32, i32) {
    %c0_i32 = arith.constant 0 : i32
    %c0_i32_0 = arith.constant 0 : i32
    %c0_i32_1 = arith.constant 0 : i32
    return %c0_i32, %c0_i32_0 : i32, i32
  }
  func.func @transform_3(%arg0: i32) -> (i32, i32, i32) {
    %c0_i32 = arith.constant 0 : i32
    %c0_i32_0 = arith.constant 0 : i32
    %c0_i32_1 = arith.constant 0 : i32
    %c0_i32_2 = arith.constant 0 : i32
    return %c0_i32, %c0_i32_0, %c0_i32_1 : i32, i32, i32
  }
  func.func @transform_4(%arg0: i32) -> (i32, i32) {
    %c0_i32 = arith.constant 0 : i32
    %c0_i32_0 = arith.constant 0 : i32
    %c0_i32_1 = arith.constant 0 : i32
    return %c0_i32, %c0_i32_0 : i32, i32
  }
  func.func @transform_5(%arg0: i32) -> (i32, i32) {
    %c0_i32 = arith.constant 0 : i32
    %c0_i32_0 = arith.constant 0 : i32
    %c0_i32_1 = arith.constant 0 : i32
    return %c0_i32, %c0_i32_0 : i32, i32
  }
  func.func @transform_6(%arg0: i32) -> (i32, i32, i32) {
    %c0_i32 = arith.constant 0 : i32
    %c0_i32_0 = arith.constant 0 : i32
    %c0_i32_1 = arith.constant 0 : i32
    return %arg0, %c0_i32, %c0_i32_0 : i32, i32, i32
  }
}

</mosaic_0001>

<bundles_post_ra>
// kernel: tpu_custom_call.1
= control target key start
LH: loop header
LB: loop body
LE: loop exit
PB: predicated region body
PF: predicated region fallthrough
CT: control target
= control target key end

     0   :  { %11 = vsyncpa [#allocation3], 0  ;;  %s2813_s0 = inlined_call_operand.vmem [shape: f32[2,4,326], index: 0, kind: input, shape index: {}]   ;;  %s2814_s1 = inlined_call_operand.vmem [shape: f32[9,8,4], index: 1, kind: input, shape index: {}]   ;;  %s2815_s2 = inlined_call_operand.vmem [shape: f32[8,1], index: 2, kind: input, shape index: {}]   ;;  %s2816_s3 = inlined_call_operand.vmem [shape: f32[2,4,8], index: 3, kind: input, shape index: {}]   ;;  %s2817_s4 = inlined_call_operand.vmem [shape: f32[16,4], index: 4, kind: input, shape index: {}]   ;;  %s2818_s5 = inlined_call_operand.vmem [shape: f32[1,288], index: 5, kind: input, shape index: {}]   ;;  %s2819_s6 = inlined_call_operand.hbm [shape: f32[2,16,288], index: 6, kind: output, shape index: {}]  }
   0x1   :  { %13 = vsyncpa [#allocation3 + $0x1], 0  ;;  %s2511_s21 = smov 0   ;;  %s2513_s22 = smov 0  }
   0x2   :  { %s2515_s23 = smov 0   ;;  %s2517_s24 = smov 0  }
   0x3 LB: > { %s2532_s25 = sadd.s32 4294967295, %s2460_s24   ;;  %s2160_s26 = sadd.s32 4294967294, %s2460_s24   ;;  %s2460_s24 = sphi %s2517_s24, %s2825_s24   ;;  %s2456_s23 = sphi %s2515_s23, %s2824_s23   ;;  %s2452_s22 = sphi %s2513_s22, %s2823_s22   ;;  %s2448_s21 = sphi %s2511_s21, %s2822_s21  }
   0x4   : > { %s2536_s27 = sadd.s32 1, %s2460_s24   ;;  %s157_s28 = sadd.s32 1, %s2456_s23 }
   0x5   : > { %s154_s29 = ssub.s32 %s2460_s24, %s2536_s27  ;;  %p167_p0 = scmp.ne.s32.totalorder %s2456_s23, %s2452_s22 }
   0x6   : > { %p155_p1 = scmp.eq.s32.totalorder %s154_s29, 0  ;;  %p168_p2 = scmp.eq.s32.totalorder %s2532_s25, 1 }
   0x7   : > { %p173_p3 = scmp.ne.s32.totalorder %s2452_s22, %s2448_s21  ;;  %p174_p4 = scmp.eq.s32.totalorder %s2160_s26, 1 }
   0x8   : > { %s2547_s30 = scalar_select %p155_p1, %s2456_s23, %s157_s28  }
   0x9   : > { %p2549_p5 = por %p168_p2, %p167_p0  ;;  %p2553_p6 = por %p174_p4, %p173_p3 }
   0xa   : > { %p2163_p7 = scmp.ge.s32.totalorder %s2460_s24, 1  ;;  %p215_p8 = scmp.lt.s32.totalorder %s2460_s24, 3 }
   0xc   : > { %p216_p9 = pnand %p2163_p7, %p215_p8 }
   0xd   : > { %p245_p10 = scmp.lt.s32.totalorder (!%p216_p9), %s2532_s25, 1  ;;  %v2462_v0 = vmov (!%p216_p9), 0.0   ;;  %vm2463_vm0 = vmmov (!%p216_p9), 0   ;;  %s2464_s14 = smov (!%p216_p9), 127   ;;  %v1752_v11 = vld [vmem:[%s2815_s2] sm:$0xff] (!%p216_p9)  ;;  %v2472_v12 = vmov (!%p216_p9), 0  }
   0xe   : > { %219 = sbr.rel (%p216_p9) target bundleno = 1187 (0x4a3), region = 44  ;;  %2254 = vmatprep.subr.mxu1 (!%p216_p9), %v2462_v0  ;;  %342 = vmatprep.mubr.f32.mxu0 (!%p216_p9), %v2462_v0  ;;  %s2465_s15 = smov (!%p216_p9), 126   ;;  %vm271_vm1 = vcmask (!%p216_p9), 1043456   ;;  %vm264_vm2 = vcmask (!%p216_p9), 1039360   ;;  %v2165_v18 = vld [vmem:[%s2814_s1 + $0x8] sm:$0xff] (!%p216_p9)  ;;  %vm267_vm3 = vcmask (!%p216_p9), 31744  }
   0xf   : > { %2256 = vmatprep.mubr.msk.f32.mxu1 (!%p216_p9), %vm2463_vm0, %v2462_v0  ;;  %s2466_s16 = smov (!%p216_p9), 110   ;;  %s2467_s17 = smov (!%p216_p9), 109   ;;  %2387 = vset.pattern.permute.xlu0 (!%p216_p9), %v2472_v12  ;;  %vm582_vm4 = vcmask (!%p216_p9), 1031168   ;;  %v252_v24 = vld [vmem:[%s2814_s1] sm:$0xff] (!%p216_p9)  ;;  %vm751_vm5 = vcmask (!%p216_p9), 900096   ;;  %v2176_v29 = vld [vmem:[%s2814_s1 + $0x10] sm:$0xff] (!%p216_p9) }
  0x10   : > { %s2468_s18 = smov (!%p216_p9), 108   ;;  %s2469_s19 = smov (!%p216_p9), 92   ;;  %2388 = vset.pattern.permute.xlu1 (!%p216_p9), %v2472_v12  ;;  %v2182_v32 = vld [vmem:[%s2814_s1 + $0x18] sm:$0xff] (!%p216_p9)  ;;  %vm920_vm6 = vcmask (!%p216_p9), 891904   ;;  %v2188_v34 = vld [vmem:[%s2814_s1 + $0x20] sm:$0xff] (!%p216_p9)  ;;  %v2194_v39 = vld [vmem:[%s2814_s1 + $0x28] sm:$0xff] (!%p216_p9) }
  0x11   : > { %s2470_s20 = smov (!%p216_p9), 91   ;;  %s2471_s26 = smov (!%p216_p9), 90   ;;  %vm1089_vm7 = vcmask (!%p216_p9), 883712   ;;  %v2200_v46 = vld [vmem:[%s2814_s1 + $0x30] sm:$0xff] (!%p216_p9)  ;;  %vm1258_vm8 = vcmask (!%p216_p9), 752640   ;;  %v2206_v49 = vld [vmem:[%s2814_s1 + $0x38] sm:$0xff] (!%p216_p9) }
  0x12   : > { %v2212_v53 = vld [vmem:[%s2814_s1 + $0x40] sm:$0xff] (!%p216_p9)  ;;  %vm1427_vm9 = vcmask (!%p216_p9), 744448   ;;  %vm1596_vm10 = vcmask (!%p216_p9), 736256   ;;  %vm1782_vm15 = vcmask (!%p216_p9), 261120   ;;  %s242_s28 = sand.u32 (!%p216_p9), 1, %s2452_s22  }
  0x13   : > { %s2332_s29 = smul.u32 (!%p216_p9), 48, %s242_s28 }
  0x15   : > { %s246_s9 = scalar_select %p245_p10, %s2532_s25, 1 }
  0x17   : > { %s2333_s10 = smul.u32 12, %s246_s9 }
  0x18   : > { %s2334_s9 = smul.u32 768, %s2532_s25  ;;  %s2772_s25 = scalar_lea.sflag [#allocation3], %s242_s28 }
  0x19   : > { %s2566_s13 = scalar_lea.vmem %s2813_s0, %s2333_s10  ;;  %s244_s10 = scalar_lea.vmem [#allocation2], %s2332_s29 }
  0x1a   : > { %v2571_v1 = vld [vmem:[%s2566_s13] sm:$0xff]  ;;  %v2577_v3 = vld [vmem:[%s2566_s13 + $0x8] sm:$0xf]  ;;  %s2098_s11 = sshll.u32 %s244_s10, 4  ;;  %s2760_s11 = int_to_ptr.vmem [resolvable:$true] %s2098_s11 }
  0x1b   : > { %258 = vrot.lane.b32.xlu1 %v2571_v1, %s2464_s14  ;;  %v257_v2 = vcombine.high %v2571_v1, %v2571_v1  ;;  %v570_v4 = vld [vmem:[%s2566_s13 + $0x8] sm:$0xf] }
  0x1c   : > { %v739_v5 = vld [vmem:[%s2566_s13 + $0x8] sm:$0xf] }
  0x1d   : > { %260 = vrot.lane.b32.xlu0 %v257_v2, %s2464_s14  ;;  %v908_v6 = vld [vmem:[%s2566_s13 + $0x8] sm:$0xf] }
  0x1e   : > { %v1077_v7 = vld [vmem:[%s2566_s13 + $0x8] sm:$0xf] }
  0x1f   : > { %578 = vrot.lane.b32.xlu1 %v257_v2, %s2465_s15  ;;  %v1246_v8 = vld [vmem:[%s2566_s13 + $0x8] sm:$0xf] }
  0x20   : > { %v1415_v9 = vld [vmem:[%s2566_s13 + $0x8] sm:$0xf] }
  0x21   : > { %262 = vrot.lane.b32.xlu0 %v2577_v3, %s2464_s14  ;;  %v1584_v10 = vld [vmem:[%s2566_s13 + $0x8] sm:$0xf]  ;;  %s2765_s14 = scalar_lea.hbm %s2819_s6, %s2334_s9 }
  0x23   : > { %576 = vrot.lane.b32.xlu1 %v2571_v1, %s2465_s15 }
  0x25   : > { %580 = vrot.lane.b32.xlu0 %v570_v4, %s2465_s15  ;;  %s2398_s15 = scalar_lea.vmem %s2760_s11, 768 }
  0x26   : > { %p2399_p11 = scmp.ne.s32.totalorder %s2760_s11, %s2398_s15 }
  0x27   : > { %749 = vrot.lane.b32.xlu1 %v739_v5, %s2466_s16 }
  0x28   : > { %p2400_p12 = pnand %p2399_p11, %p2549_p5 }
  0x29   : > { %747 = vrot.lane.b32.xlu0 %v257_v2, %s2466_s16 }
  0x2a   : > { %p2401_p13 = pneg %p2400_p12 }
  0x2b   : > { %916 = vrot.lane.b32.xlu1 %v257_v2, %s2467_s17 }
  0x2d   : > { %745 = vrot.lane.b32.xlu0 %v2571_v1, %s2466_s16  ;;  %s2473_s16 = smov [#allocation2]  }
  0x2f   : > { %914 = vrot.lane.b32.xlu1 %v2571_v1, %s2467_s17 }
  0x31   : > { %918 = vrot.lane.b32.xlu0 %v908_v6, %s2467_s17  ;;  %s2402_s17 = sshll.u32 %s2473_s16, 4  ;;  %s2403_s17 = int_to_ptr.vmem [resolvable:$false] %s2402_s17 }
  0x32   : > { %p2405_p0 = scmp.lt.s32.totalorder %s2760_s11, %s2403_s17 }
  0x33   : > { %1087 = vrot.lane.b32.xlu1 %v1077_v7, %s2468_s18 }
  0x35   : > { %1085 = vrot.lane.b32.xlu0 %v257_v2, %s2468_s18 }
  0x37   : > { %1254 = vrot.lane.b32.xlu1 %v257_v2, %s2469_s19 }
  0x39   : > { %1083 = vrot.lane.b32.xlu0 %v2571_v1, %s2468_s18  ;;  %s2404_s18 = scalar_lea.vmem %s2403_s17, 1536 }
  0x3a   : > { %p2406_p1 = scmp.lt.s32.totalorder %s2404_s18, %s2398_s15 }
  0x3b   : > { %1252 = vrot.lane.b32.xlu1 %v2571_v1, %s2469_s19 }
  0x3c   : > { %p2407_p2 = por %p2406_p1, %p2405_p0 }
  0x3d   : > { %1256 = vrot.lane.b32.xlu0 %v1246_v8, %s2469_s19 }
  0x3e   : > { %p2408_p3 = pnand %p2407_p2, %p2401_p13 }
  0x3f   : > { %1425 = vrot.lane.b32.xlu1 %v1415_v9, %s2470_s20 }
  0x41   : > { %1423 = vrot.lane.b32.xlu0 %v257_v2, %s2470_s20 }
  0x43   : > { %1592 = vrot.lane.b32.xlu1 %v257_v2, %s2471_s26 }
  0x45   : > { %1421 = vrot.lane.b32.xlu0 %v2571_v1, %s2470_s20 }
  0x47   : > { %1590 = vrot.lane.b32.xlu1 %v2571_v1, %s2471_s26 }
  0x49   : > { %1594 = vrot.lane.b32.xlu0 %v1584_v10, %s2471_s26 }
  0x4d   : > { %1755 = vperm.xlu0 %2387, %v1752_v11  }
  0x8d   : > { %v259_v13 = vpop.permute.xlu1 %258 }
  0x8f   : > { %v261_v14 = vpop.permute.xlu0 %260 }
  0x90   : > { %v265_v19 = vsel %vm264_vm2, %v259_v13, %v261_v14 }
  0x91   : > { %v579_v15 = vpop.permute.xlu1 %578 }
  0x93   : > { %v263_v16 = vpop.permute.xlu0 %262 }
  0x94   : > { %2255 = vmatpush3.msk.msra.mxu1 %vm271_vm1, %v263_v16  ;;  %v266_v17 = vsel %vm264_vm2, %v261_v14, %v263_v16  ;;  %vm1816_vm2 = vcmask 64512  }
  0x95   : > { %2166 = vmatprep.subr.msk.mxu0 %vm271_vm1, %v266_v17  ;;  %v577_v20 = vpop.permute.xlu1 %576  ;;  %2257 = vmatmul.mubr.msk.f32.vlgmr.msra.gmra.mrb[0].mxu1 %vm267_vm3, %v2165_v18 }
  0x96   : > { %2167 = vmatpush1.msk.msra.mxu0 %vm271_vm1, %v265_v19  ;;  %2259 = vmatprep.subr.mxu1 %v2462_v0  ;;  %v583_v26 = vsel %vm582_vm4, %v577_v20, %v579_v15 }
  0x97   : > { %2168 = vmatmul.mubr.msk.f32.vlgmr.msra.gmra.mrb[0].mxu0 %vm267_vm3, %v2165_v18  ;;  %2171 = vmatprep.subr.msk.mxu0 %vm271_vm1, %v257_v2  ;;  %v581_v21 = vpop.permute.xlu0 %580 }
  0x98   : > { %2172 = vmatpush1.msk.msra.mxu0 %vm271_vm1, %v2571_v1  ;;  %v584_v22 = vsel %vm582_vm4, %v579_v15, %v581_v21  ;;  %492 = vmatprep.mubr.f32.mxu0 %v2462_v0 }
  0x99   : > { %2260 = vmatpush3.msk.msra.mxu1 %vm271_vm1, %v2577_v3  ;;  %2177 = vmatprep.subr.msk.mxu0 %vm271_vm1, %v584_v22  ;;  %v750_v23 = vpop.permute.xlu1 %749 }
  0x9a   : > { %2261 = vmatprep.mubr.msk.f32.mxu1 %vm2463_vm0, %v2462_v0  ;;  %2264 = vmatprep.subr.mxu1 %v2462_v0 }
  0x9b   : > { %2262 = vmatmul.mubr.msk.f32.vlgmr.msra.gmra.mrb[2].mxu1 %vm267_vm3, %v252_v24  ;;  %v748_v25 = vpop.permute.xlu0 %747 }
  0x9c   : > { %2265 = vmatpush3.msk.msra.mxu1 %vm271_vm1, %v581_v21  ;;  %2266 = vmatprep.mubr.msk.f32.mxu1 %vm2463_vm0, %v2462_v0  ;;  %v753_v28 = vsel %vm751_vm5, %v748_v25, %v750_v23 }
  0x9d   : > { %2269 = vmatprep.subr.mxu1 %v2462_v0  ;;  %v917_v27 = vpop.permute.xlu1 %916 }
  0x9f   : > { %2173 = vmatmul.mubr.msk.f32.vlgmr.msra.gmra.mrb[0].mxu0 %vm267_vm3, %v252_v24  ;;  %v746_v30 = vpop.permute.xlu0 %745  ;;  %2267 = vmatmul.mubr.msk.f32.vlgmr.msra.gmra.mrb[4].mxu1 %vm267_vm3, %v2176_v29 }
  0xa0   : > { %2178 = vmatpush1.msk.msra.mxu0 %vm271_vm1, %v583_v26  ;;  %658 = vmatprep.mubr.f32.mxu0 %v2462_v0  ;;  %v752_v35 = vsel %vm751_vm5, %v746_v30, %v748_v25  ;;  %v1763_v26 = vlaneseq }
  0xa1   : > { %2183 = vmatprep.subr.msk.mxu0 %vm271_vm1, %v753_v28  ;;  %2270 = vmatpush3.msk.msra.mxu1 %vm271_vm1, %v750_v23  ;;  %v915_v31 = vpop.permute.xlu1 %914 }
  0xa2   : > { %2271 = vmatprep.mubr.msk.f32.mxu1 %vm2463_vm0, %v2462_v0  ;;  %2274 = vmatprep.subr.mxu1 %v2462_v0  ;;  %v921_v42 = vsel %vm920_vm6, %v915_v31, %v917_v27  ;;  %v1764_v28 = vshrl.u32 %v1763_v26, 7 }
  0xa3   : > { %v919_v33 = vpop.permute.xlu0 %918  ;;  %2272 = vmatmul.mubr.msk.f32.vlgmr.msra.gmra.mrb[6].mxu1 %vm267_vm3, %v2182_v32 }
  0xa4   : > { %2275 = vmatpush3.msk.msra.mxu1 %vm271_vm1, %v919_v33  ;;  %2276 = vmatprep.mubr.msk.f32.mxu1 %vm2463_vm0, %v2462_v0  ;;  %v922_v37 = vsel %vm920_vm6, %v917_v27, %v919_v33  ;;  %v1761_v27 = vld [vmem:[%s2818_s5] sm:$0x7]  ;;  %v1773_v30 = vsub.s32 2, %v1764_v28 }
  0xa5   : > { %v1088_v36 = vpop.permute.xlu1 %1087  ;;  %2279 = vmatprep.subr.mxu1 %v2462_v0  ;;  %vm1788_vm11 = vcmp.gt.f32.partialorder %v1761_v27, 0.5 }
  0xa6   : > { %v1789_v31 = vsel %vm1788_vm11, 1, %v2472_v12 }
  0xa7   : > { %2179 = vmatmul.mubr.msk.f32.vlgmr.msra.gmra.mrb[0].mxu0 %vm267_vm3, %v2176_v29  ;;  %v1086_v38 = vpop.permute.xlu0 %1085  ;;  %2277 = vmatmul.mubr.msk.f32.vlgmr.msra.gmra.mrb[8].mxu1 %vm267_vm3, %v2188_v34  ;;  %v1765_v29 = vsub.s32 0, %v1764_v28 }
  0xa8   : > { %2184 = vmatpush1.msk.msra.mxu0 %vm271_vm1, %v752_v35  ;;  %827 = vmatprep.mubr.f32.mxu0 %v2462_v0  ;;  %v1091_v44 = vsel %vm1089_vm7, %v1086_v38, %v1088_v36  ;;  %v1801_v35 = vrot.slane %v1789_v31, %v1773_v30 }
  0xa9   : > { %2189 = vmatprep.subr.msk.mxu0 %vm271_vm1, %v922_v37  ;;  %v1255_v40 = vpop.permute.xlu1 %1254  ;;  %2280 = vmatpush3.msk.msra.mxu1 %vm271_vm1, %v1088_v36 }
  0xaa   : > { %2281 = vmatprep.mubr.msk.f32.mxu1 %vm2463_vm0, %v2462_v0  ;;  %2284 = vmatprep.subr.mxu1 %v2462_v0  ;;  %vm1804_vm13 = vcmp.eq.s32.totalorder %v1801_v35, 1 }
  0xab   : > { %v1084_v41 = vpop.permute.xlu0 %1083  ;;  %2282 = vmatmul.mubr.msk.f32.vlgmr.msra.gmra.mrb[10].mxu1 %vm267_vm3, %v2194_v39 }
  0xac   : > { %2286 = vmatprep.mubr.msk.f32.mxu1 %vm2463_vm0, %v2462_v0  ;;  %v1090_v50 = vsel %vm1089_vm7, %v1084_v41, %v1086_v38  ;;  %v1766_v38 = vrot.slane %v1761_v27, %v1765_v29 }
  0xad   : > { %v1253_v43 = vpop.permute.xlu1 %1252 }
  0xae   : > { %v1259_v55 = vsel %vm1258_vm8, %v1253_v43, %v1255_v40 }
  0xaf   : > { %2185 = vmatmul.mubr.msk.f32.vlgmr.msra.gmra.mrb[0].mxu0 %vm267_vm3, %v2182_v32  ;;  %v1257_v45 = vpop.permute.xlu0 %1256  ;;  %v1769_v32 = vsub.s32 1, %v1764_v28 }
  0xb0   : > { %2190 = vmatpush1.msk.msra.mxu0 %vm271_vm1, %v921_v42  ;;  %996 = vmatprep.mubr.f32.mxu0 %v2462_v0  ;;  %v1260_v51 = vsel %vm1258_vm8, %v1255_v40, %v1257_v45 }
  0xb1   : > { %2195 = vmatprep.subr.msk.mxu0 %vm271_vm1, %v1091_v44  ;;  %2285 = vmatpush3.msk.msra.mxu1 %vm271_vm1, %v1257_v45  ;;  %v1426_v47 = vpop.permute.xlu1 %1425  ;;  %v1797_v36 = vrot.slane %v1789_v31, %v1769_v32  ;;  %v1770_v41 = vrot.slane %v1761_v27, %v1769_v32 }
  0xb2   : > { %2287 = vmatmul.mubr.msk.f32.vlgmr.msra.gmra.mrb[12].mxu1 %vm267_vm3, %v2200_v46  ;;  %2289 = vmatprep.subr.mxu1 %v2462_v0 }
  0xb3   : > { %v1424_v48 = vpop.permute.xlu0 %1423  ;;  %2290 = vmatpush3.msk.msra.mxu1 %vm271_vm1, %v1426_v47  ;;  %2291 = vmatprep.mubr.msk.f32.mxu1 %vm2463_vm0, %v2462_v0  ;;  %vm1803_vm14 = vcmp.eq.s32.totalorder %v1797_v36, 1 }
  0xb4   : > { %2294 = vmatprep.subr.mxu1 %v2462_v0  ;;  %v1429_v56 = vsel %vm1427_vm9, %v1424_v48, %v1426_v47 }
  0xb5   : > { %v1593_v57 = vpop.permute.xlu1 %1592 }
  0xb6   : > { %2292 = vmatmul.mubr.msk.f32.vlgmr.msra.gmra.mrb[14].mxu1 %vm267_vm3, %v2206_v49 }
  0xb7   : > { %2191 = vmatmul.mubr.msk.f32.vlgmr.msra.gmra.mrb[0].mxu0 %vm267_vm3, %v2188_v34  ;;  %v1422_v52 = vpop.permute.xlu0 %1421  ;;  %2296 = vmatprep.mubr.msk.f32.mxu1 %vm2463_vm0, %v2462_v0  ;;  %v1793_v34 = vrot.slane %v1789_v31, %v1765_v29 }
  0xb8   : > { %2196 = vmatpush1.msk.msra.mxu0 %vm271_vm1, %v1090_v50  ;;  %1165 = vmatprep.mubr.f32.mxu0 %v2462_v0  ;;  %v1428_v58 = vsel %vm1427_vm9, %v1422_v52, %v1424_v48 }
  0xb9   : > { %2201 = vmatprep.subr.msk.mxu0 %vm271_vm1, %v1260_v51  ;;  %v1591_v60 = vpop.permute.xlu1 %1590  ;;  %vm1802_vm12 = vcmp.eq.s32.totalorder %v1793_v34, 1 }
  0xba   : > { %v1597_v61 = vsel %vm1596_vm10, %v1591_v60, %v1593_v57  ;;  %v1813_v60 = vld [vmem:[%s2816_s3] sm:$0xf] }
  0xbb   : > { %v1595_v54 = vpop.permute.xlu0 %1594 }
  0xbc   : > { %2295 = vmatpush3.msk.msra.mxu1 %vm271_vm1, %v1595_v54  ;;  %v1598_v59 = vsel %vm1596_vm10, %v1593_v57, %v1595_v54 }
  0xbd   : > { %2297 = vmatmul.mubr.msk.f32.vlgmr.msra.gmra.mrb[16].mxu1 %vm267_vm3, %v2212_v53 }
  0xbf   : > { %2197 = vmatmul.mubr.msk.f32.vlgmr.msra.gmra.mrb[0].mxu0 %vm267_vm3, %v2194_v39  ;;  %v1774_v39 = vrot.slane %v1761_v27, %v1773_v30 }
  0xc0   : > { %2202 = vmatpush1.msk.msra.mxu0 %vm271_vm1, %v1259_v55  ;;  %1334 = vmatprep.mubr.f32.mxu0 %v2462_v0 }
  0xc1   : > { %2207 = vmatprep.subr.msk.mxu0 %vm271_vm1, %v1429_v56  ;;  %v2218_v56 = vld [vmem:[%s2816_s3 + $0x4] sm:$0xf] }
  0xc7   : > { %2203 = vmatmul.mubr.msk.f32.vlgmr.msra.gmra.mrb[0].mxu0 %vm267_vm3, %v2200_v46 }
  0xc8   : > { %2208 = vmatpush1.msk.msra.mxu0 %vm271_vm1, %v1428_v58  ;;  %1503 = vmatprep.mubr.f32.mxu0 %v2462_v0 }
  0xc9   : > { %2213 = vmatprep.subr.msk.mxu0 %vm271_vm1, %v1598_v59 }
  0xcc   : > { %v1756_v33 = vpop.permute.xlu0 %1755 }
  0xcf   : > { %2209 = vmatmul.mubr.msk.f32.vlgmr.msra.gmra.mrb[0].mxu0 %vm267_vm3, %v2206_v49 }
  0xd0   : > { %2214 = vmatpush1.msk.msra.mxu0 %vm271_vm1, %v1597_v61  ;;  %1672 = vmatprep.mubr.f32.mxu0 %v2462_v0  ;;  %v1964_v61 = vld [vmem:[%s2817_s4] sm:$0xff] }
  0xd1   : > { %2299 = vmatprep.subr.mxu0 %v2462_v0  ;;  %2311 = vmatprep.mubr.msk.f32.mxu1 %vm267_vm3, %v1964_v61 }
  0xd7   : > { %2215 = vmatmul.mubr.msk.f32.vlgmr.msra.gmra.mrb[0].mxu0 %vm267_vm3, %v2212_v53 }
  0xd8   : > { %2301 = vmatprep.mubr.msk.f32.mxu0 %vm2463_vm0, %v2462_v0 }
 0x168   : > { %v415_v62 = vpop.f32.mrb[0].mxu1 }
 0x169   : > { %v2258_v63 = vpop.f32.mrb[1].mxu1 }
 0x16e   : > { %v565_v1 = vpop.f32.mrb[2].mxu1 }
 0x16f   : > { %v566_v2 = vadd.f32 %v565_v1, %v415_v62  ;;  %v2263_v3 = vpop.f32.mrb[3].mxu1 }
 0x172   : > { %v731_v4 = vpop.f32.mrb[4].mxu1 }
 0x173   : > { %v737_v5 = vadd.f32 %v731_v4, %v566_v2  ;;  %v2268_v6 = vpop.f32.mrb[5].mxu1  ;;  %v1965_v2 = vld [vmem:[%s2817_s4 + $0x8] sm:$0xff] }
 0x176   : > { %v900_v7 = vpop.f32.mrb[6].mxu1 }
 0x177   : > { %v906_v8 = vadd.f32 %v900_v7, %v737_v5  ;;  %v2273_v9 = vpop.f32.mrb[7].mxu1 }
 0x17a   : > { %v1069_v10 = vpop.f32.mrb[8].mxu1 }
 0x17b   : > { %v1075_v11 = vadd.f32 %v1069_v10, %v906_v8  ;;  %v2278_v13 = vpop.f32.mrb[9].mxu1 }
 0x17e   : > { %v1238_v14 = vpop.f32.mrb[10].mxu1 }
 0x17f   : > { %v1244_v15 = vadd.f32 %v1238_v14, %v1075_v11  ;;  %v2283_v16 = vpop.f32.mrb[11].mxu1 }
 0x185   : > { %v1407_v17 = vpop.f32.mrb[12].mxu1 }
 0x186   : > { %v1413_v18 = vadd.f32 %v1407_v17, %v1244_v15  ;;  %v2288_v19 = vpop.f32.mrb[13].mxu1 }
 0x189   : > { %v1576_v20 = vpop.f32.mrb[14].mxu1 }
 0x18a   : > { %v1582_v21 = vadd.f32 %v1576_v20, %v1413_v18  ;;  %v2293_v22 = vpop.f32.mrb[15].mxu1 }
 0x190   : > { %v1745_v23 = vpop.f32.mrb[16].mxu1 }
 0x191   : > { %v1751_v24 = vadd.f32 %v1745_v23, %v1582_v21  ;;  %v2298_v25 = vpop.f32.mrb[17].mxu1 }
 0x193   : > { %v2722_v37 = vadd.f32 %v1756_v33, %v1751_v24 }
 0x195   : > { %v1807_v45 = vsel %vm1804_vm13, %v2722_v37, -inf  ;;  %v1780_v47 = vmul.f32 %v1774_v39, %v2722_v37 }
 0x196   : > { %v1808_v51 = vsel %vm1782_vm15, %v1807_v45, -inf }
 0x197   : > { %v1783_v54 = vsel %vm1782_vm15, %v1780_v47, 0.0 }
 0x1aa   : > { %v1674_v40 = vpop.f32.mrb[0].mxu0 }
 0x1ab   : > { %v2724_v42 = vadd.f32 %v1756_v33, %v1674_v40  ;;  %v1676_v43 = vpop.f32.mrb[1].mxu0 }
 0x1ac   : > { %v2726_v44 = vadd.f32 %v1756_v33, %v1676_v43 }
 0x1ad   : > { %v1805_v12 = vsel %vm1802_vm12, %v2724_v42, -inf  ;;  %v1778_v46 = vmul.f32 %v1766_v38, %v2724_v42 }
 0x1ae   : > { %v1806_v48 = vsel %vm1803_vm14, %v2726_v44, -inf  ;;  %v1779_v49 = vmul.f32 %v1770_v41, %v2726_v44 }
 0x1af   : > { %v1809_v50 = vmax.f32 %v1805_v12, %v1806_v48 }
 0x1b0   : > { %v1781_v52 = vadd.f32 %v1779_v49, %v1778_v46 }
 0x1b1   : > { %v1810_v53 = vmax.f32 %v1809_v50, %v1808_v51 }
 0x1b2   : > { %v1784_v55 = vadd.f32 %v1783_v54, %v1781_v52 }
 0x1b3   : > { %1811 = vmax.xlane.f32.xlu1 %v1810_v53 }
 0x1b4   : > { %1785 = vadd.xlane.f32.xlu0 %v1784_v55 }
 0x240   : > { %v1812_v57 = vpop.xlane.xlu1 %1811 }
 0x241   : > { %2300 = vmatpush3.msra.mxu0 %v1812_v57  ;;  %v1786_v58 = vpop.xlane.xlu0 %1785 }
 0x242   : > { %v1787_v59 = vmul.f32 0.00390625, %v1786_v58  ;;  %2302 = vmatmul.mubr.msk.f32.vlgmr.msra.gmra.mrb[2].mxu0 %vm1816_vm2, %v2218_v56  ;;  %2304 = vmatprep.subr.mxu0 %v2462_v0 }
 0x243   : > { %2306 = vmatprep.mubr.msk.f32.mxu0 %vm2463_vm0, %v2462_v0 }
 0x244   : > { %2305 = vmatpush3.msra.mxu0 %v1787_v59 }
 0x24a   : > { %2307 = vmatmul.mubr.msk.f32.vlgmr.msra.gmra.mrb[2].mxu0 %vm1816_vm2, %v1813_v60 }
 0x31d   : > { %v1959_v62 = vpop.f32.mrb[2].mxu0 }
 0x31e   : > { %v1963_v63 = vmax.f32 %v1959_v62, 0.0  ;;  %v2308_v1 = vpop.f32.mrb[3].mxu0 }
 0x320   : > { %2309 = vmatprep.subr.msk.mxu1 %vm271_vm1, %v1963_v63 }
 0x321   : > { %2310 = vmatpush3.msk.msra.mxu1 %vm271_vm1, %v1963_v63 }
 0x322   : > { %2312 = vmatmul.mubr.msk.f32.vlgmr.msra.gmra.mrb[18].mxu1 %vm267_vm3, %v1965_v2 }
 0x3f5   : > { %v2313_v0 = vpop.f32.mrb[18].mxu1 }
 0x3f6   : > { %v2225_v3 = vmul.f32 -1.442695, %v2313_v0  ;;  %v2041_v4 = vpop.f32.mrb[19].mxu1 }
 0x3f7   : > { %v2224_v5 = vmul.f32 -1.442695, %v2041_v4 }
 0x3f8   : > { %2390 = vpow2.f32 %v2225_v3 }
 0x3f9   : > { %2392 = vpow2.f32 %v2224_v5 }
 0x402   : > { %v2391_v6 = vpop.eup %2390 }
 0x403   : > { %v2393_v7 = vpop.eup %2392  ;;  %v2057_v8 = vadd.f32 1.0, %v2391_v6 }
 0x404   : > { %v2056_v9 = vadd.f32 1.0, %v2393_v7 }
 0x405   : > { %2394 = vrcp.f32 %v2057_v8 }
 0x406   : > { %2396 = vrcp.f32 %v2056_v9 }
 0x40f   : > { %v2395_v10 = vpop.eup %2394 }
 0x410   : > { %v2397_v11 = vpop.eup %2396  ;;  %2069 = vperm.xlu0 %2387, %v2395_v10  }
 0x411   : > { %2064 = vperm.xlu1 %2388, %v2397_v11  }
 0x48f   : > { %v2070_v13 = vpop.permute.xlu0 %2069 }
 0x490   : > { %v2075_v14 = vmul.f32 %v2070_v13, %v2724_v42  ;;  %v2076_v15 = vmul.f32 %v2070_v13, %v2726_v44  ;;  %v2077_v16 = vmul.f32 %v2070_v13, %v2722_v37  ;;  %v2065_v17 = vpop.permute.xlu1 %2064 }
 0x491   : > { %v2072_v18 = vmul.f32 %v2065_v17, %v2724_v42  ;;  %v2073_v19 = vmul.f32 %v2065_v17, %v2726_v44  ;;  %v2074_v20 = vmul.f32 %v2065_v17, %v2722_v37 }
 0x492   : > { %2081 = vst [vmem:[%s244_s10 + $0x18] sm:$0xff] %v2075_v14  ;;  %2082 = vst [vmem:[%s244_s10 + $0x20] sm:$0xff] %v2076_v15 }
 0x493   : > { %2083 = vst.msk [vmem:[%s244_s10 + $0x28] sm:$0xff] %vm1782_vm15, %v2077_v16  ;;  %2078 = vst [vmem:[%s244_s10] sm:$0xff] %v2072_v18 }
 0x494   : > { %2079 = vst [vmem:[%s244_s10 + $0x8] sm:$0xff] %v2073_v19  ;;  %2080 = vst.msk [vmem:[%s244_s10 + $0x10] sm:$0xff] %vm1782_vm15, %v2074_v20 }
 0x495   : > { %2411 = shalt.err (!%p2408_p3)
}
 0x496   : > { %s2412_s19 = scalar_lea.hbm %s2765_s14, 768  ;;  %s2416_s28 = scalar_lea.hbm %s2819_s6, 1536 }
 0x497   : > { %p2413_p4 = scmp.ne.s32.totalorder %s2765_s14, %s2412_s19  ;;  %p2417_p9 = scmp.lt.u32.totalorder %s2765_s14, %s2819_s6 }
 0x498   : > { %p2418_p10 = scmp.lt.u32.totalorder %s2416_s28, %s2412_s19  ;;  %p2420_p12 = scmp.lt.u32.totalorder %s2412_s19, %s2765_s14 }
 0x499   : > { %p2414_p7 = pnand %p2413_p4, %p2549_p5 }
 0x49a   : > { %p2419_p11 = por %p2418_p10, %p2417_p9 }
 0x49b   : > { %p2415_p8 = pneg %p2414_p7 }
 0x49c   : > { %p2421_p13 = por %p2420_p12, %p2419_p11 }
 0x49e   : > { %p2422_p0 = pnand %p2421_p13, %p2415_p8 }
 0x4a0   : > { %2425 = shalt.err (!%p2422_p0)
}
 0x4a1   : > { %s2474_s10 = smov 384   ;;  %s2475_s12 = smov 24  }
 0x4a2   : > { %2335 = dma.vmem_to_hbm [thread:$0]  (%p2549_p5), %s2760_s11, 768, %s2765_s14, %s2772_s25, %s2474_s10, %s2474_s10, %s2475_s12  }
 0x4a3 PF: > { %p2341_p1 = scmp.ge.s32.totalorder %s2460_s24, 2  ;;  %s2113_s13 = sand.u32 1, %s2448_s21  }
 0x4a4   : > { %s2114_s15 = scalar_lea.sflag [#allocation3], %s2113_s13 }
 0x4a5   : > { %p2338_p2 = pnand %p2341_p1, %p2553_p6 }
 0x4a7   : > { %2443 = dma.done.wait (!%p2338_p2), %s2114_s15, 768  }
 0x4a8   : > { %2445 = vsyncadd (!%p2338_p2), %s2114_s15, 4294966528  ;;  %p16_p3 = scmp.ge.s32.totalorder %s2536_s27, 4   ;;  %s2822_s21 = smov %s2452_s22 }
 0x4a9   : > { %s2823_s22 = smov %s2456_s23  ;;  %s2824_s23 = smov %s2547_s30 }
 0x4aa   : > { %s2825_s24 = smov %s2536_s27  ;;  %18 = sbr.rel (!%p16_p3) target bundleno = 3 (0x3), region = 88 }
 0x4b1   :  { %2119 = vsyncpa [#allocation3], 1 }
 0x4b2   :  { %2121 = vsyncpa [#allocation3 + $0x1], 1 }

</bundles_post_ra>
